<compile_context>
chip_gen: v5e
topology: v5e:2x2
jax: 0.10.0
libtpu: 0.0.40
codegen_flags: <defaults>
</compile_context>

<pallas_src>
import functools

import jax
import jax.numpy as jnp
from jax.experimental import pallas as pl
from jax.experimental.pallas import tpu as pltpu

# One (sublane, lane) vreg-shaped tile of random keys; supports N <= 1024.
ROWS, LANES = 8, 128
CAP = ROWS * LANES                      # max supported X.shape[0]
IDX_MASK = CAP - 1                      # low 10 bits carry the candidate index
HIGH_MASK = 0x7FFFFFFF & ~IDX_MASK      # clear sign bit + index bits


def _random_selector_kernel(bits_ref, out_ref, *, n, top_k):
    # bits_ref: VMEM (ROWS, LANES) int32 raw random bits
    # out_ref:  SMEM (top_k,)      int32 selected indices
    row = jax.lax.broadcasted_iota(jnp.int32, (ROWS, LANES), 0)
    col = jax.lax.broadcasted_iota(jnp.int32, (ROWS, LANES), 1)
    flat_idx = row * LANES + col

    # Pack: [0 | 21 random bits | 10 index bits].  Every live key is unique
    # and non-negative, so a single max per step identifies both the winner
    # value and its index, and the sentinel (-1) can never collide.
    keys = (bits_ref[...] & jnp.int32(HIGH_MASK)) | flat_idx
    keys = jnp.where(flat_idx < n, keys, jnp.int32(-1))   # mask padding (>= n)

    sentinel = jnp.int32(-1)

    if top_k <= 16:
        # Small static top_k: Python unroll (the chain is serial anyway).
        for k in range(top_k):
            maxv = jnp.max(keys, keepdims=True)                 # (1,1), stays in vregs
            keys = jnp.where(keys == maxv, sentinel, keys)      # remove winner (vector)
            out_ref[k] = maxv[0, 0] & jnp.int32(IDX_MASK)       # scalar write, off-chain
    else:
        # Large top_k: keep code size constant with a visible loop.
        def body(k, carry_keys):
            maxv = jnp.max(carry_keys, keepdims=True)
            new_keys = jnp.where(carry_keys == maxv, sentinel, carry_keys)
            out_ref[k] = maxv[0, 0] & jnp.int32(IDX_MASK)
            return new_keys

        jax.lax.fori_loop(0, top_k, body, keys)


@functools.partial(jax.jit, static_argnames=("n", "top_k"))
def _random_select(key, *, n, top_k):
    # Random bits drawn here (portable across TPU HW and interpret mode),
    # fused with the pallas_call into one executable.
    bits_u32 = jax.random.bits(key, (ROWS, LANES), dtype=jnp.uint32)
    bits_i32 = jax.lax.bitcast_convert_type(bits_u32, jnp.int32)
    kernel = functools.partial(_random_selector_kernel, n=n, top_k=top_k)
    return pl.pallas_call(
        kernel,
        out_shape=jax.ShapeDtypeStruct((top_k,), jnp.int32),
        in_specs=[pl.BlockSpec(memory_space=pltpu.VMEM)],
        out_specs=pl.BlockSpec(memory_space=pltpu.SMEM),
    )(bits_i32)


def random_selector(X, top_k, key):
    """Pallas equivalent of RandomSelector(top_k).forward(X)."""
    n = X.shape[0]
    assert 0 < top_k <= n <= CAP, "this kernel supports top_k <= N <= 1024"
    return _random_select(key, n=n, top_k=top_k)


if __name__ == "__main__":
    root = jax.random.PRNGKey(0)
    kx, kdraw = jax.random.split(root)

    # Small example input consistent with the module: only X.shape[0] matters.
    X = jax.random.normal(kx, (8, 4, 16, 16), dtype=jnp.float32)
    top_k = 4

    indices = random_selector(X, top_k, kdraw)
    indices = jax.block_until_ready(indices)

    idx_host = jax.device_get(indices)
    # Sanity checks: correct count, valid range, no duplicates.
    assert idx_host.shape == (top_k,)
    assert idx_host.dtype == jnp.int32
    assert ((idx_host >= 0) & (idx_host < X.shape[0])).all()
    assert len(set(int(i) for i in idx_host)) == top_k

    print("KERNEL_OK")
</pallas_src>

<mosaic_0001>
module attributes {stable_mosaic.version = 11 : i64} {
  func.func @_random_selector_kernel(%arg0: memref<8x128xi32, #tpu.memory_space<vmem>>, %arg1: memref<4xi32, #tpu.memory_space<smem>>) attributes {dimension_semantics = [], scalar_prefetch = 0 : i64, scratch_operands = 0 : i64, tpu.core_type = #tpu.core_type<tc>} {
    %0 = tpu.iota {dimensions = array<i32: 0>} : vector<8x128xi32>
    %1 = tpu.iota {dimensions = array<i32: 1>} : vector<8x128xi32>
    %c128_i32 = arith.constant 128 : i32
    %2 = vector.broadcast %c128_i32 : i32 to vector<8x128xi32>
    %3 = arith.muli %0, %2 : vector<8x128xi32>
    %4 = arith.addi %3, %1 : vector<8x128xi32>
    %c0 = arith.constant 0 : index
    %c0_0 = arith.constant 0 : index
    %5 = vector.load %arg0[%c0, %c0_0] : memref<8x128xi32, #tpu.memory_space<vmem>>, vector<8x128xi32>
    %c2147482624_i32 = arith.constant 2147482624 : i32
    %6 = vector.broadcast %c2147482624_i32 : i32 to vector<8x128xi32>
    %7 = arith.andi %5, %6 : vector<8x128xi32>
    %8 = arith.ori %7, %4 : vector<8x128xi32>
    %c8_i32 = arith.constant 8 : i32
    %9 = vector.broadcast %c8_i32 : i32 to vector<8x128xi32>
    %10 = arith.cmpi slt, %4, %9 : vector<8x128xi32>
    %c-1_i32 = arith.constant -1 : i32
    %11 = vector.broadcast %c-1_i32 : i32 to vector<8x128xi32>
    %12 = arith.select %10, %8, %11 : vector<8x128xi1>, vector<8x128xi32>
    %13 = vector.shape_cast %12 : vector<8x128xi32> to vector<1x8x128xi32>
    %cst = arith.constant dense<-2147483648> : vector<1xi32>
    %14 = vector.multi_reduction <maxsi>, %13, %cst [1, 2] : vector<1x8x128xi32> to vector<1xi32>
    %15 = vector.shape_cast %14 : vector<1xi32> to vector<1x1x1xi32>
    %16 = vector.extract %15[0, 0, 0] : i32 from vector<1x1x1xi32>
    %17 = vector.broadcast %16 : i32 to vector<1x1xi32>
    %18 = vector.broadcast %17 : vector<1x1xi32> to vector<8x128xi32>
    %19 = arith.cmpi eq, %12, %18 : vector<8x128xi32>
    %c-1_i32_1 = arith.constant -1 : i32
    %20 = vector.broadcast %c-1_i32_1 : i32 to vector<8x128xi32>
    %21 = arith.select %19, %20, %12 : vector<8x128xi1>, vector<8x128xi32>
    %22 = vector.extract %17[0, 0] : i32 from vector<1x1xi32>
    %c1023_i32 = arith.constant 1023 : i32
    %23 = arith.andi %22, %c1023_i32 : i32
    %c0_2 = arith.constant 0 : index
    %24 = memref.load %arg1[%c0_2] : memref<4xi32, #tpu.memory_space<smem>>
    memref.store %23, %arg1[%c0_2] : memref<4xi32, #tpu.memory_space<smem>>
    %25 = vector.shape_cast %21 : vector<8x128xi32> to vector<1x8x128xi32>
    %cst_3 = arith.constant dense<-2147483648> : vector<1xi32>
    %26 = vector.multi_reduction <maxsi>, %25, %cst_3 [1, 2] : vector<1x8x128xi32> to vector<1xi32>
    %27 = vector.shape_cast %26 : vector<1xi32> to vector<1x1x1xi32>
    %28 = vector.extract %27[0, 0, 0] : i32 from vector<1x1x1xi32>
    %29 = vector.broadcast %28 : i32 to vector<1x1xi32>
    %30 = vector.broadcast %29 : vector<1x1xi32> to vector<8x128xi32>
    %31 = arith.cmpi eq, %21, %30 : vector<8x128xi32>
    %c-1_i32_4 = arith.constant -1 : i32
    %32 = vector.broadcast %c-1_i32_4 : i32 to vector<8x128xi32>
    %33 = arith.select %31, %32, %21 : vector<8x128xi1>, vector<8x128xi32>
    %34 = vector.extract %29[0, 0] : i32 from vector<1x1xi32>
    %c1023_i32_5 = arith.constant 1023 : i32
    %35 = arith.andi %34, %c1023_i32_5 : i32
    %c1 = arith.constant 1 : index
    %36 = memref.load %arg1[%c1] : memref<4xi32, #tpu.memory_space<smem>>
    memref.store %35, %arg1[%c1] : memref<4xi32, #tpu.memory_space<smem>>
    %37 = vector.shape_cast %33 : vector<8x128xi32> to vector<1x8x128xi32>
    %cst_6 = arith.constant dense<-2147483648> : vector<1xi32>
    %38 = vector.multi_reduction <maxsi>, %37, %cst_6 [1, 2] : vector<1x8x128xi32> to vector<1xi32>
    %39 = vector.shape_cast %38 : vector<1xi32> to vector<1x1x1xi32>
    %40 = vector.extract %39[0, 0, 0] : i32 from vector<1x1x1xi32>
    %41 = vector.broadcast %40 : i32 to vector<1x1xi32>
    %42 = vector.broadcast %41 : vector<1x1xi32> to vector<8x128xi32>
    %43 = arith.cmpi eq, %33, %42 : vector<8x128xi32>
    %c-1_i32_7 = arith.constant -1 : i32
    %44 = vector.broadcast %c-1_i32_7 : i32 to vector<8x128xi32>
    %45 = arith.select %43, %44, %33 : vector<8x128xi1>, vector<8x128xi32>
    %46 = vector.extract %41[0, 0] : i32 from vector<1x1xi32>
    %c1023_i32_8 = arith.constant 1023 : i32
    %47 = arith.andi %46, %c1023_i32_8 : i32
    %c2 = arith.constant 2 : index
    %48 = memref.load %arg1[%c2] : memref<4xi32, #tpu.memory_space<smem>>
    memref.store %47, %arg1[%c2] : memref<4xi32, #tpu.memory_space<smem>>
    %49 = vector.shape_cast %45 : vector<8x128xi32> to vector<1x8x128xi32>
    %cst_9 = arith.constant dense<-2147483648> : vector<1xi32>
    %50 = vector.multi_reduction <maxsi>, %49, %cst_9 [1, 2] : vector<1x8x128xi32> to vector<1xi32>
    %51 = vector.shape_cast %50 : vector<1xi32> to vector<1x1x1xi32>
    %52 = vector.extract %51[0, 0, 0] : i32 from vector<1x1x1xi32>
    %53 = vector.broadcast %52 : i32 to vector<1x1xi32>
    %54 = vector.extract %53[0, 0] : i32 from vector<1x1xi32>
    %c1023_i32_10 = arith.constant 1023 : i32
    %55 = arith.andi %54, %c1023_i32_10 : i32
    %c3 = arith.constant 3 : index
    %56 = memref.load %arg1[%c3] : memref<4xi32, #tpu.memory_space<smem>>
    memref.store %55, %arg1[%c3] : memref<4xi32, #tpu.memory_space<smem>>
    return
  }
}

</mosaic_0001>

<bundles_post_ra>
// kernel: _random_select.1
= control target key start
LH: loop header
LB: loop body
LE: loop exit
PB: predicated region body
PF: predicated region fallthrough
CT: control target
= control target key end

     0   :  { %v9_v0 = vlaneseq  ;;  %s192_s0 = inlined_call_operand.vmem [shape: s32[8,128], index: 0, kind: input, shape index: {}]   ;;  %s193_s1 = inlined_call_operand.hbm [shape: s32[4], index: 1, kind: output, shape index: {}]  }
   0x1   :  { %6 = vsyncpa [#allocation3], 0  ;;  %v15_v1 = vld [vmem:[%s192_s0] sm:$0xff]  ;;  %s142_s15 = sshll.u32 %s193_s1, 4  ;;  %s175_s18 = smov [#allocation2]   ;;  %s143_s15 = int_to_ptr.hbm [resolvable:$true] %s142_s15 }
   0x2   :  { %v10_v2 = vshrl.u32 %v9_v0, 7  ;;  %v12_v3 = vand.u32 127, %v9_v0  ;;  %v16_v5 = vand.u32 2147482624, %v15_v1 }
   0x4   :  { %v13_v4 = vmul.u32 128, %v10_v2 }
   0x6   :  { %v14_v6 = vadd.s32 %v13_v4, %v12_v3 }
   0x8   :  { %v17_v7 = vor.u32 %v16_v5, %v14_v6  ;;  %vm18_vm0 = vcmp.lt.s32.totalorder %v14_v6, 8 }
   0xa   :  { %v19_v8 = vsel %vm18_vm0, %v17_v7, 4294967295 }
   0xb   :  { %v21_v9 = vshra.s32 %v19_v8, 16  ;;  %v20_v11 = vand.u32 65535, %v19_v8 }
   0xd   :  { %v23_v10 = vcvt.s32.f32 %v21_v9  ;;  %v22_v12 = vcvt.s32.f32 %v20_v11 }
   0xf   :  { %24 = vmax.xlane.f32.xlu0 %v23_v10 }
  0x82   :  { %v25_v13 = vpop.xlane.xlu0 %24 }
  0x83   :  { %vm26_vm1 = vcmp.eq.f32.partialorder %v23_v10, %v25_v13  ;;  %v31_v15 = vcvt.f32.s32 %v25_v13 }
  0x84   :  { %v27_v14 = vsel %vm26_vm1, %v22_v12, -inf }
  0x85   :  { %28 = vmax.xlane.f32.xlu0 %v27_v14  ;;  %v32_v17 = vshll.u32 %v31_v15, 16 }
  0xf8   :  { %v29_v16 = vpop.xlane.xlu0 %28 }
  0xf9   :  { %v30_v18 = vcvt.f32.s32 %v29_v16 }
  0xfb   :  { %v33_v19 = vadd.s32 %v32_v17, %v30_v18 }
  0xfd   :  { %v34_v20 = vrot.slane %v33_v19, 4 }
  0xff   :  { %vm35_vm2 = vcmp.gt.s32.totalorder %v33_v19, %v34_v20 }
 0x100   :  { %v36_v21 = vsel %vm35_vm2, %v33_v19, %v34_v20 }
 0x101   :  { %v37_v22 = vrot.slane %v36_v21, 2 }
 0x103   :  { %vm38_vm3 = vcmp.gt.s32.totalorder %v36_v21, %v37_v22 }
 0x104   :  { %v39_v23 = vsel %vm38_vm3, %v36_v21, %v37_v22 }
 0x105   :  { %v40_v24 = vrot.slane %v39_v23, 1 }
 0x107   :  { %vm41_vm4 = vcmp.gt.s32.totalorder %v39_v23, %v40_v24 }
 0x108   :  { %v42_v25 = vsel %vm41_vm4, %v39_v23, %v40_v24 }
 0x109   :  { %152 = vpush %v42_v25 }
 0x13a   :  { %s153_s0 = spop %152 }
 0x13b   :  { %v44_v26 = vstv %s153_s0  ;;  %s47_s8 = sand.u32 1023, %s153_s0 }
 0x13c   :  { %vm45_vm5 = vcmp.eq.s32.totalorder %v19_v8, %v44_v26  ;;  %49 = sst [smem:[#allocation2]] %s47_s8 }
 0x13d   :  { %v46_v27 = vsel %vm45_vm5, 4294967295, %v19_v8 }
 0x13e   :  { %v51_v28 = vshra.s32 %v46_v27, 16  ;;  %v50_v30 = vand.u32 65535, %v46_v27 }
 0x140   :  { %v53_v29 = vcvt.s32.f32 %v51_v28  ;;  %v52_v32 = vcvt.s32.f32 %v50_v30 }
 0x142   :  { %54 = vmax.xlane.f32.xlu1 %v53_v29 }
 0x1b5   :  { %v55_v31 = vpop.xlane.xlu1 %54 }
 0x1b6   :  { %vm56_vm6 = vcmp.eq.f32.partialorder %v53_v29, %v55_v31  ;;  %v61_v34 = vcvt.f32.s32 %v55_v31 }
 0x1b7   :  { %v57_v33 = vsel %vm56_vm6, %v52_v32, -inf }
 0x1b8   :  { %58 = vmax.xlane.f32.xlu1 %v57_v33  ;;  %v62_v36 = vshll.u32 %v61_v34, 16 }
 0x22b   :  { %v59_v35 = vpop.xlane.xlu1 %58 }
 0x22c   :  { %v60_v37 = vcvt.f32.s32 %v59_v35 }
 0x22e   :  { %v63_v38 = vadd.s32 %v62_v36, %v60_v37 }
 0x230   :  { %v64_v39 = vrot.slane %v63_v38, 4 }
 0x232   :  { %vm65_vm7 = vcmp.gt.s32.totalorder %v63_v38, %v64_v39 }
 0x233   :  { %v66_v40 = vsel %vm65_vm7, %v63_v38, %v64_v39 }
 0x234   :  { %v67_v41 = vrot.slane %v66_v40, 2 }
 0x236   :  { %vm68_vm8 = vcmp.gt.s32.totalorder %v66_v40, %v67_v41 }
 0x237   :  { %v69_v42 = vsel %vm68_vm8, %v66_v40, %v67_v41 }
 0x238   :  { %v70_v43 = vrot.slane %v69_v42, 1 }
 0x23a   :  { %vm71_vm9 = vcmp.gt.s32.totalorder %v69_v42, %v70_v43 }
 0x23b   :  { %v72_v44 = vsel %vm71_vm9, %v69_v42, %v70_v43 }
 0x23c   :  { %154 = vpush %v72_v44 }
 0x26d   :  { %s155_s9 = spop %154 }
 0x26e   :  { %v74_v45 = vstv %s155_s9  ;;  %s77_s10 = sand.u32 1023, %s155_s9 }
 0x26f   :  { %vm75_vm10 = vcmp.eq.s32.totalorder %v46_v27, %v74_v45  ;;  %79 = sst [smem:[#allocation2 + $0x1]] %s77_s10 }
 0x270   :  { %v76_v46 = vsel %vm75_vm10, 4294967295, %v46_v27 }
 0x271   :  { %v81_v47 = vshra.s32 %v76_v46, 16  ;;  %v80_v49 = vand.u32 65535, %v76_v46 }
 0x273   :  { %v83_v48 = vcvt.s32.f32 %v81_v47  ;;  %v82_v51 = vcvt.s32.f32 %v80_v49 }
 0x275   :  { %84 = vmax.xlane.f32.xlu2 %v83_v48 }
 0x2e8   :  { %v85_v50 = vpop.xlane.xlu2 %84 }
 0x2e9   :  { %vm86_vm11 = vcmp.eq.f32.partialorder %v83_v48, %v85_v50  ;;  %v91_v53 = vcvt.f32.s32 %v85_v50 }
 0x2ea   :  { %v87_v52 = vsel %vm86_vm11, %v82_v51, -inf }
 0x2eb   :  { %88 = vmax.xlane.f32.xlu2 %v87_v52  ;;  %v92_v55 = vshll.u32 %v91_v53, 16 }
 0x35e   :  { %v89_v54 = vpop.xlane.xlu2 %88 }
 0x35f   :  { %v90_v56 = vcvt.f32.s32 %v89_v54 }
 0x361   :  { %v93_v57 = vadd.s32 %v92_v55, %v90_v56 }
 0x363   :  { %v94_v58 = vrot.slane %v93_v57, 4 }
 0x365   :  { %vm95_vm12 = vcmp.gt.s32.totalorder %v93_v57, %v94_v58 }
 0x366   :  { %v96_v59 = vsel %vm95_vm12, %v93_v57, %v94_v58 }
 0x367   :  { %v97_v60 = vrot.slane %v96_v59, 2 }
 0x369   :  { %vm98_vm13 = vcmp.gt.s32.totalorder %v96_v59, %v97_v60 }
 0x36a   :  { %v99_v61 = vsel %vm98_vm13, %v96_v59, %v97_v60 }
 0x36b   :  { %v100_v62 = vrot.slane %v99_v61, 1 }
 0x36d   :  { %vm101_vm14 = vcmp.gt.s32.totalorder %v99_v61, %v100_v62 }
 0x36e   :  { %v102_v63 = vsel %vm101_vm14, %v99_v61, %v100_v62 }
 0x36f   :  { %156 = vpush %v102_v63 }
 0x3a0   :  { %s157_s11 = spop %156 }
 0x3a1   :  { %v104_v0 = vstv %s157_s11  ;;  %s107_s12 = sand.u32 1023, %s157_s11 }
 0x3a2   :  { %vm105_vm15 = vcmp.eq.s32.totalorder %v76_v46, %v104_v0  ;;  %109 = sst [smem:[#allocation2 + $0x2]] %s107_s12 }
 0x3a3   :  { %v106_v1 = vsel %vm105_vm15, 4294967295, %v76_v46 }
 0x3a4   :  { %v111_v2 = vshra.s32 %v106_v1, 16  ;;  %v110_v4 = vand.u32 65535, %v106_v1 }
 0x3a6   :  { %v113_v3 = vcvt.s32.f32 %v111_v2  ;;  %v112_v6 = vcvt.s32.f32 %v110_v4 }
 0x3a8   :  { %114 = vmax.xlane.f32.xlu0 %v113_v3 }
 0x41b   :  { %v115_v5 = vpop.xlane.xlu0 %114 }
 0x41c   :  { %vm116_vm0 = vcmp.eq.f32.partialorder %v113_v3, %v115_v5  ;;  %v121_v8 = vcvt.f32.s32 %v115_v5 }
 0x41d   :  { %v117_v7 = vsel %vm116_vm0, %v112_v6, -inf }
 0x41e   :  { %118 = vmax.xlane.f32.xlu1 %v117_v7  ;;  %v122_v10 = vshll.u32 %v121_v8, 16 }
 0x491   :  { %v119_v9 = vpop.xlane.xlu1 %118 }
 0x492   :  { %v120_v11 = vcvt.f32.s32 %v119_v9 }
 0x494   :  { %v123_v12 = vadd.s32 %v122_v10, %v120_v11 }
 0x496   :  { %v124_v13 = vrot.slane %v123_v12, 4 }
 0x498   :  { %vm125_vm1 = vcmp.gt.s32.totalorder %v123_v12, %v124_v13 }
 0x499   :  { %v126_v14 = vsel %vm125_vm1, %v123_v12, %v124_v13 }
 0x49a   :  { %v127_v15 = vrot.slane %v126_v14, 2 }
 0x49c   :  { %vm128_vm2 = vcmp.gt.s32.totalorder %v126_v14, %v127_v15 }
 0x49d   :  { %v129_v16 = vsel %vm128_vm2, %v126_v14, %v127_v15 }
 0x49e   :  { %v130_v17 = vrot.slane %v129_v16, 1 }
 0x4a0   :  { %vm131_vm3 = vcmp.gt.s32.totalorder %v129_v16, %v130_v17 }
 0x4a1   :  { %v132_v18 = vsel %vm131_vm3, %v129_v16, %v130_v17 }
 0x4a2   :  { %158 = vpush %v132_v18 }
 0x4d3   :  { %s159_s16 = spop %158 }
 0x4d4   :  { %s134_s17 = sand.u32 1023, %s159_s16 }
 0x4d5   :  { %136 = sst [smem:[#allocation2 + $0x3]] %s134_s17 }
 0x4d6   :  { %145 = dma.smem_to_hbm %s175_s18, 16, %s143_s15, [#allocation3]  }
 0x4d7   :  { %173 = dma.done.wait [#allocation3], 16  }
 0x4d8   :  { %174 = vsyncadd [#allocation3], 4294967280 }
 0x4d9   :  { %150 = sfence }
 0x4da   :  { %151 = vsyncpa [#allocation3], 1 }

</bundles_post_ra>
